<compile_context>
chip_gen: v7x
topology: tpu7x:2x2x1
jax: 0.10.0
libtpu: 0.0.40
codegen_flags: <defaults>
</compile_context>

<pallas_src>
import math

import jax
import jax.numpy as jnp
import numpy as np
from jax.experimental import pallas as pl
from jax.experimental.pallas import tpu as pltpu

_LANES = 128
_SUBLANES = 8
_FOCAL_BLOCK_ROWS_MAX = 2048      # 2048x128 f32 = 1 MiB per input per buffer
_FOCAL_SHARDS = 2                 # leading "parallel" axis -> 2 TCs on v7x
_SL1_BLOCK_ROWS = 512
_LOG_LO = math.log(1e-4)          # log of clamped-sigmoid lower bound
_LOG_HI = math.log(1.0 - 1e-4)    # log of clamped-sigmoid upper bound


# --------------------------- slab layout helpers -----------------------------

def _to_slab(x, pad_value=0.0, dtype=jnp.float32):
    """Flatten row-major to a lane-dense [rows, 128] slab (rows % 8 == 0).

    dtype=None keeps the upstream dtype (f32 / bf16), so bf16 heatmaps move
    half the HBM bytes and are upcast in-kernel; other dtypes are promoted to
    f32.  gt heatmaps are never downcast (exact g == 1.0 test must hold).
    """
    if dtype is None:
        dtype = x.dtype if x.dtype in (jnp.float32, jnp.bfloat16) else jnp.float32
    flat = x.reshape(-1).astype(dtype)
    n = flat.shape[0]
    cols = (n + _LANES - 1) // _LANES
    rows = max(((cols + _SUBLANES - 1) // _SUBLANES) * _SUBLANES, _SUBLANES)
    pad = rows * _LANES - n
    if pad:
        flat = jnp.pad(flat, (0, pad), constant_values=pad_value)
    return flat.reshape(rows, _LANES)


# --------------------------- focal-loss kernel --------------------------------

def _focal_partial_kernel(x_ref, g_ref, out_ref):
    """CornerNet focal-loss partials into a per-shard (3, 8, 128) accumulator.

    out_ref is the output block itself (resident across the reduction axis);
    rows: 0 = pos_loss partial, 1 = neg_loss partial, 2 = num_pos partial.
    The gt slab is padded with 2.0 so padded cells are neither pos (g == 1)
    nor neg (g < 1) and contribute exactly zero -> no mask slab needed.
    """
    @pl.when(pl.program_id(1) == 0)
    def _():
        out_ref[...] = jnp.zeros_like(out_ref)

    x = x_ref[...].astype(jnp.float32)
    g = g_ref[...].astype(jnp.float32)

    # Stable clamped-sigmoid pieces: 1 exp + 1 log + 1 reciprocal (EUP slots).
    e = jnp.exp(-jnp.abs(x))                       # exp(-|x|) in (0, 1]
    sp = jnp.log(1.0 + e)                          # softplus(-|x|)
    r = pl.reciprocal(1.0 + e)                     # exact (parity with torch)
    p = jnp.where(x >= 0.0, r, e * r)              # sigmoid(x)
    p = jnp.clip(p, 1e-4, 1.0 - 1e-4)              # clamped-sigmoid util parity
    log_p = jnp.clip(jnp.minimum(x, 0.0) - sp, _LOG_LO, _LOG_HI)     # log(clip(sig))
    log_1mp = jnp.clip(jnp.minimum(-x, 0.0) - sp, _LOG_LO, _LOG_HI)  # log(clip(1-sig))

    omg = 1.0 - g
    sq = omg * omg
    neg_w = sq * sq                                # (1 - g)^4, 2 muls
    omp = 1.0 - p

    is_pos = g == 1.0
    pos_term = jnp.where(is_pos, log_p * (omp * omp), 0.0)
    neg_term = jnp.where(g < 1.0, log_1mp * (p * p) * neg_w, 0.0)
    pos_ind = jnp.where(is_pos, 1.0, 0.0)

    # Sublane-aligned partial fold: pure VPU vreg adds, no XLU, no SMEM RMW.
    def fold(v):
        return v.reshape(-1, _SUBLANES, _LANES).sum(axis=0)

    out_ref[0] += fold(pos_term)
    out_ref[1] += fold(neg_term)
    out_ref[2] += fold(pos_ind)


def _focal_tiling(rows):
    """Choose (shards, block_rows, tiles_per_shard, padded_rows) with small pad."""
    if rows <= _FOCAL_BLOCK_ROWS_MAX:
        return 1, rows, 1, rows
    shards = _FOCAL_SHARDS
    max_waste = max(rows // 8, shards * 256)       # <=12.5% or <=512 rows
    for br in (2048, 1024, 512, 256):
        quantum = shards * br
        padded = ((rows + quantum - 1) // quantum) * quantum
        if padded - rows <= max_waste:
            return shards, br, padded // quantum, padded
    br = 256
    quantum = shards * br
    padded = ((rows + quantum - 1) // quantum) * quantum
    return shards, br, padded // quantum, padded


def _focal_sums(x2d, g2d):
    """Gridded focal-loss reduction; returns (pos_sum, neg_sum, num_pos)."""
    rows = x2d.shape[0]
    shards, block_rows, tiles, padded = _focal_tiling(rows)
    if padded != rows:
        x2d = jnp.pad(x2d, ((0, padded - rows), (0, 0)))
        g2d = jnp.pad(g2d, ((0, padded - rows), (0, 0)), constant_values=2.0)

    in_bytes = padded * _LANES * (x2d.dtype.itemsize + g2d.dtype.itemsize)
    out_elems = shards * 3 * _SUBLANES * _LANES
    vmem_need = (2 * block_rows * _LANES *
                 (x2d.dtype.itemsize + g2d.dtype.itemsize)   # 2 bufs x 2 inputs
                 + 2 * out_elems * 4)
    vmem_limit = int(min(max(vmem_need + (8 << 20), 16 << 20), 48 << 20))

    part = pl.pallas_call(
        _focal_partial_kernel,
        out_shape=jax.ShapeDtypeStruct((shards, 3, _SUBLANES, _LANES), jnp.float32),
        grid=(shards, tiles),
        in_specs=[
            pl.BlockSpec((block_rows, _LANES), lambda s, t, _n=tiles: (s * _n + t, 0)),
            pl.BlockSpec((block_rows, _LANES), lambda s, t, _n=tiles: (s * _n + t, 0)),
        ],
        out_specs=pl.BlockSpec((None, 3, _SUBLANES, _LANES),
                               lambda s, t: (s, 0, 0, 0)),
        compiler_params=pltpu.CompilerParams(
            dimension_semantics=("parallel", "arbitrary"),
            vmem_limit_bytes=vmem_limit),
        cost_estimate=pl.CostEstimate(
            flops=30 * padded * _LANES,
            transcendentals=3 * padded * _LANES,
            bytes_accessed=in_bytes + out_elems * 4),
    )(x2d, g2d)
    # Single tiny cross-lane reduce, done once (fused XLA, not per grid step).
    return jnp.sum(part[:, 0]), jnp.sum(part[:, 1]), jnp.sum(part[:, 2])


# --------------------------- smooth-L1 kernel ---------------------------------

def _make_stacked_sl1_kernel(target_sel):
    """One kernel computing all smooth-L1 partial sums (beta = 1, sum reduce).

    target_sel[l] == 0 -> compare preds[l] against the gt slab,
    target_sel[l] == 1 -> compare against the target_shape slab.
    Zero padding on both sides contributes exactly 0 (|d| = 0), so no mask.
    """
    n_terms = len(target_sel)

    def kernel(preds_ref, gt_ref, shape_ref, out_ref):
        @pl.when(pl.program_id(0) == 0)
        def _():
            for l in range(n_terms):
                out_ref[l] = 0.0
        gt = gt_ref[...]
        tsh = shape_ref[...]
        for l, sel in enumerate(target_sel):
            tgt = gt if sel == 0 else tsh
            d = jnp.abs(preds_ref[l] - tgt)
            per = jnp.where(d < 1.0, 0.5 * d * d, d - 0.5)
            out_ref[l] += jnp.sum(per)
    return kernel


def _stacked_smooth_l1_sums(preds_slab, gt2d, sh2d, target_sel):
    L, rows, _ = preds_slab.shape
    block_rows = min(_SL1_BLOCK_ROWS, rows)
    pad = (-rows) % block_rows
    if pad:
        preds_slab = jnp.pad(preds_slab, ((0, 0), (0, pad), (0, 0)))
        gt2d = jnp.pad(gt2d, ((0, pad), (0, 0)))
        sh2d = jnp.pad(sh2d, ((0, pad), (0, 0)))
        rows += pad
    tiles = rows // block_rows
    elems = L * rows * _LANES
    return pl.pallas_call(
        _make_stacked_sl1_kernel(tuple(target_sel)),
        out_shape=jax.ShapeDtypeStruct((L,), jnp.float32),
        grid=(tiles,),
        in_specs=[
            pl.BlockSpec((L, block_rows, _LANES), lambda t: (0, t, 0)),
            pl.BlockSpec((block_rows, _LANES), lambda t: (t, 0)),
            pl.BlockSpec((block_rows, _LANES), lambda t: (t, 0)),
        ],
        out_specs=pl.BlockSpec(memory_space=pltpu.MemorySpace.SMEM),
        compiler_params=pltpu.CompilerParams(
            dimension_semantics=("arbitrary",)),
        cost_estimate=pl.CostEstimate(
            flops=6 * elems, transcendentals=0,
            bytes_accessed=(L + 2) * rows * _LANES * 4),
    )(preds_slab, gt2d, sh2d)


# --------------------------- fused loss (jitted) ------------------------------

def _compute_losses(ct_logits, gt_ct, poly_init, poly_coarse, py_preds,
                    py_local_preds, gt_polys, *, weights, with_dml, dml_active):
    scalar_stats = {}
    loss = jnp.float32(0.0)

    # ---- ct loss: CornerNet focal over the heatmap (one gridded pallas_call) ----
    x2d = _to_slab(ct_logits, 0.0, dtype=None)   # keep bf16 if upstream is bf16
    g2d = _to_slab(gt_ct, 2.0, dtype=None)       # never downcast; pad=2 => no pos/neg
    pos_sum, neg_sum, num_pos = _focal_sums(x2d, g2d)
    ct_loss = jnp.where(num_pos == 0.0,
                        -neg_sum,
                        -(pos_sum + neg_sum) / jnp.maximum(num_pos, 1.0))
    scalar_stats['ct_loss'] = ct_loss
    loss = loss + ct_loss * weights['ct_loss']

    num_polys = poly_init.shape[0]
    n_py = len(py_preds)
    n = n_py - 1 if with_dml else n_py
    n_local = len(py_local_preds)

    if num_polys == 0:
        init_py_loss = jnp.sum(poly_init) * 0.0
        coarse_py_loss = jnp.sum(poly_coarse) * 0.0
        py_terms = [jnp.sum(py_preds[i]) * 0.0 for i in range(n)]
        shape_terms = [jnp.sum(py_preds[i]) * 0.0 for i in range(n)]
        local_terms = [jnp.sum(p) * 0.0 for p in py_local_preds]
    else:
        target_dis = jnp.concatenate([gt_polys[:, 1:], gt_polys[:, :1]], axis=1)
        target_shape = target_dis - gt_polys
        pred_tensors = [poly_init, poly_coarse] \
            + [py_preds[i] for i in range(n)] + list(py_local_preds)
        # TODO(synk): the n shape slabs duplicate py_pred bytes; they could be
        # derived in-kernel via pltpu.roll with a per-polygon lane layout, but
        # that needs 2P-aligned rows + wrap fix-up, so they are shipped as data.
        shape_tensors = []
        for i in range(n):
            p = py_preds[i]
            pred_dis = jnp.concatenate([p[:, 1:], p[:, :1]], axis=1)
            shape_tensors.append(pred_dis - p)
        all_tensors = pred_tensors + shape_tensors
        target_sel = (0,) * len(pred_tensors) + (1,) * len(shape_tensors)

        preds_slab = jnp.stack([_to_slab(t, 0.0) for t in all_tensors], axis=0)
        gt2d_poly = _to_slab(gt_polys, 0.0)
        sh2d = _to_slab(target_shape, 0.0)
        sums = _stacked_smooth_l1_sums(preds_slab, gt2d_poly, sh2d, target_sel)
        means = sums / float(gt_polys.size)   # every term is mean over (N, P, 2)

        init_py_loss = means[0]
        coarse_py_loss = means[1]
        py_terms = [means[2 + i] for i in range(n)]
        local_terms = [means[2 + n + j] for j in range(n_local)]
        shape_terms = [means[2 + n + n_local + i] for i in range(n)]

    scalar_stats['init_py_loss'] = init_py_loss
    scalar_stats['coarse_py_loss'] = coarse_py_loss
    loss = loss + init_py_loss * weights['init']
    loss = loss + coarse_py_loss * weights['coarse']

    py_loss = jnp.float32(0.0)
    shape_loss = jnp.float32(0.0)
    for i in range(n):
        part_py_loss = py_terms[i]
        shape_part_loss = shape_terms[i]
        py_loss = py_loss + part_py_loss / n_py
        shape_loss = shape_loss + shape_part_loss
        scalar_stats['py_loss_{}'.format(i)] = part_py_loss
    loss = loss + py_loss * weights['evolve']

    if n_local > 0:
        n = n_local   # mirrors the torch code: `n` (and py_loss) are reused here
        for i in range(n):
            part_py_loss = local_terms[i]
            py_loss = py_loss + part_py_loss / n
            scalar_stats['py_local_loss_{}'.format(i)] = part_py_loss
        loss = loss + py_loss * weights['evolve_local']

    # DMLoss path (dml_active and num_polys != 0) is rejected in forward();
    # only the zero-surrogate branch is reachable here.
    dm_loss = jnp.sum(py_preds[-1]) * 0.0
    scalar_stats['end_set_loss'] = dm_loss
    loss = loss + dm_loss / n_py * weights['evolve']

    shape_loss = shape_loss / (n + 1) if dml_active else shape_loss / n
    scalar_stats['shape_loss'] = shape_loss
    loss = loss + shape_loss

    scalar_stats['loss'] = loss
    return loss, scalar_stats


# ------------------------------ wrapper ---------------------------------------

class NetworkWrapper:
    def __init__(self, net, with_dml=True, with_wsll=False, start_epoch=10,
                 weight_dict=None, use_Mask_Loss=False, get_instance_mask=False):
        # (original prints 'Initial Wrapper Init'; omitted to keep stdout clean)
        self.with_dml = with_dml
        self.with_wsll = with_wsll
        self.net = net
        self.weight_dict = weight_dict
        self.start_epoch = start_epoch
        self.use_Mask_Loss = use_Mask_Loss
        self.get_instance_mask = get_instance_mask
        # ct_crit (FocalLoss), py_crit (smooth_l1), shape_loss are fused into the
        # single jitted loss function below (two pallas_calls total).
        # TODO(synk): DMLoss / WeightedSmoothL1Loss / MaskRasterizationLoss / CBLoss /
        # boundary-head FocalLoss are external criteria not defined in this module;
        # the default configuration never reaches those paths.
        self.train_combine = hasattr(self.net, 'combine')
        self.train_bd = hasattr(self.net, 'bd_head')
        self._loss_fn_cache = {}

    def _get_loss_fn(self, dml_active):
        key = bool(dml_active)
        if key not in self._loss_fn_cache:
            weights = {k: float(v) for k, v in self.weight_dict.items()}
            with_dml = bool(self.with_dml)

            def fn(ct_logits, gt_ct, poly_init, poly_coarse, py_preds,
                   py_local_preds, gt_polys):
                return _compute_losses(ct_logits, gt_ct, poly_init, poly_coarse,
                                       py_preds, py_local_preds, gt_polys,
                                       weights=weights, with_dml=with_dml,
                                       dml_active=key)

            self._loss_fn_cache[key] = jax.jit(fn)
        return self._loss_fn_cache[key]

    def __call__(self, batch):
        return self.forward(batch)

    def forward(self, batch):
        output = self.net(batch['inp'], batch)
        if 'test' in batch['meta']:
            return output
        epoch = int(batch['epoch'])

        # keyPointsMask = batch['keypoints_mask'][batch['ct_01']]
        # TODO(synk): boolean-mask gather has a data-dependent output shape; with
        # with_wsll=False and epoch < start_epoch it is unused, so not materialised.

        num_polys = int(output['poly_init'].shape[0])
        dml_active = bool(self.with_dml and epoch >= self.start_epoch)
        if dml_active and num_polys != 0:
            raise NotImplementedError('DMLoss path not reconstructed')  # TODO(synk)
        if self.with_wsll and num_polys != 0:
            raise NotImplementedError('WeightedSmoothL1Loss not reconstructed')  # TODO(synk)
        if self.use_Mask_Loss or self.train_combine or self.train_bd:
            raise NotImplementedError('mask/combine/bd loss paths not reconstructed')  # TODO(synk)

        py_local = tuple(output['py_local_pred']) if 'py_local_pred' in output else ()
        loss_fn = self._get_loss_fn(dml_active)
        loss, scalar_stats = loss_fn(output['ct_hm'], batch['ct_hm'],
                                     output['poly_init'], output['poly_coarse'],
                                     tuple(output['py_pred']), py_local,
                                     output['img_gt_polys'])
        return output, loss, scalar_stats


class SyntheticSnakeNet:
    """Stand-in for the contour backbone; NetworkWrapper only consumes its output dict."""
    # TODO(synk): the real backbone (`self.net`) is external to this module; it is
    # stubbed with deterministic synthetic outputs of the expected shapes.

    def __init__(self, outputs):
        self._outputs = outputs

    def __call__(self, inp, batch):
        del inp, batch
        return dict(self._outputs)


# ------------------------- pure-JAX reference (for a sanity check) ------------

def _pure_jax_reference_loss(ct_logits, gt_ct, poly_init, poly_coarse, py_preds,
                             gt_polys, weight_dict, with_dml):
    def sl1(a, b):
        d = jnp.abs(a - b)
        return jnp.mean(jnp.where(d < 1.0, 0.5 * d * d, d - 0.5))

    p = jnp.clip(jax.nn.sigmoid(ct_logits), 1e-4, 1.0 - 1e-4)
    pos = (gt_ct == 1.0).astype(jnp.float32)
    neg = (gt_ct < 1.0).astype(jnp.float32)
    neg_w = (1.0 - gt_ct) ** 4
    pos_loss = jnp.sum(jnp.log(p) * (1.0 - p) ** 2 * pos)
    neg_loss = jnp.sum(jnp.log(1.0 - p) * p ** 2 * neg_w * neg)
    num_pos = jnp.sum(pos)
    ct_loss = jnp.where(num_pos == 0, -neg_loss,
                        -(pos_loss + neg_loss) / jnp.maximum(num_pos, 1.0))
    loss = ct_loss * weight_dict['ct_loss']
    loss += sl1(poly_init, gt_polys) * weight_dict['init']
    loss += sl1(poly_coarse, gt_polys) * weight_dict['coarse']
    target_shape = jnp.concatenate([gt_polys[:, 1:], gt_polys[:, :1]], axis=1) - gt_polys
    n = len(py_preds) - 1 if with_dml else len(py_preds)
    py_loss = 0.0
    shape_loss = 0.0
    for i in range(n):
        py_loss += sl1(py_preds[i], gt_polys) / len(py_preds)
        pshape = jnp.concatenate([py_preds[i][:, 1:], py_preds[i][:, :1]], axis=1) - py_preds[i]
        shape_loss += sl1(pshape, target_shape)
    loss += py_loss * weight_dict['evolve']
    loss += shape_loss / n        # dm else-branch contributes 0
    return loss


if __name__ == "__main__":
    key = jax.random.PRNGKey(0)
    ks = jax.random.split(key, 8)

    B, C, H, W = 2, 4, 16, 16        # heatmap: NCHW, like the torch conv output
    N, P = 8, 32                     # N contours, P points, (x, y)
    down = 4

    inp = jax.random.normal(ks[0], (B, 3, H * down, W * down), jnp.float32)  # NCHW image

    ct_hm_logits = jax.random.normal(ks[1], (B, C, H, W), jnp.float32)
    gt_ct_hm = jnp.clip(jax.nn.sigmoid(jax.random.normal(ks[2], (B, C, H, W))), 0.0, 0.99)
    gt_ct_hm = gt_ct_hm.at[:, :, 4, 7].set(1.0)   # a few exact-1 center peaks

    img_gt_polys = jax.random.uniform(ks[3], (N, P, 2), jnp.float32) * (H * down)
    poly_init = img_gt_polys + jax.random.normal(ks[4], (N, P, 2), jnp.float32) * 2.0
    poly_coarse = img_gt_polys + jax.random.normal(ks[5], (N, P, 2), jnp.float32) * 1.0
    py_pred = [img_gt_polys + jax.random.normal(jax.random.fold_in(ks[6], i),
                                                (N, P, 2), jnp.float32) * 0.5
               for i in range(4)]

    net = SyntheticSnakeNet({
        'ct_hm': ct_hm_logits,
        'poly_init': poly_init,
        'poly_coarse': poly_coarse,
        'img_gt_polys': img_gt_polys,
        'py_pred': py_pred,
    })

    weight_dict = {'ct_loss': 1.0, 'init': 0.1, 'coarse': 0.1,
                   'evolve': 1.0, 'evolve_local': 1.0}
    wrapper = NetworkWrapper(net, with_dml=True, with_wsll=False,
                             start_epoch=10, weight_dict=weight_dict)

    batch = {
        'inp': inp,
        'ct_hm': gt_ct_hm,
        'keypoints_mask': jnp.ones((B, N // B, P), jnp.float32),
        'ct_01': jnp.ones((B, N // B), dtype=bool),
        'epoch': 0,
        'meta': {},
    }

    output, loss, scalar_stats = wrapper(batch)
    jax.block_until_ready(loss)

    ref = _pure_jax_reference_loss(ct_hm_logits, gt_ct_hm, poly_init, poly_coarse,
                                   py_pred, img_gt_polys, weight_dict, with_dml=True)
    if not np.allclose(np.asarray(loss), np.asarray(ref), rtol=1e-2, atol=1e-3):
        raise AssertionError(f"loss mismatch: pallas={float(loss)} ref={float(ref)}")

    print("KERNEL_OK")
</pallas_src>

<mosaic_0001>
module attributes {stable_mosaic.version = 11 : i64} {
  func.func @_focal_partial_kernel(%arg0: i32, %arg1: i32, %arg2: memref<16x128xf32, #tpu.memory_space<vmem>>, %arg3: memref<16x128xf32, #tpu.memory_space<vmem>>, %arg4: memref<1x3x8x128xf32, #tpu.memory_space<vmem>>) attributes {dimension_semantics = [#tpu.dimension_semantics<parallel>, #tpu.dimension_semantics<arbitrary>], iteration_bounds = array<i64: 1, 1>, scalar_prefetch = 0 : i64, scratch_operands = 0 : i64, tpu.core_type = #tpu.core_type<tc>, window_params = [{transform_indices = @transform_0, window_bounds = array<i64: 16, 128>}, {transform_indices = @transform_1, window_bounds = array<i64: 16, 128>}, {transform_indices = @transform_2, window_bounds = array<i64: 1, 3, 8, 128>}]} {
    %c0_i32 = arith.constant 0 : i32
    %0 = arith.cmpi eq, %arg1, %c0_i32 : i32
    %1 = arith.extui %0 : i1 to i32
    %c0_i32_0 = arith.constant 0 : i32
    %2 = arith.cmpi ne, %1, %c0_i32_0 : i32
    scf.if %2 {
      %cst_49 = arith.constant 0.000000e+00 : f32
      %85 = vector.broadcast %cst_49 : f32 to vector<3x8x128xf32>
      %c0_50 = arith.constant 0 : index
      %c0_51 = arith.constant 0 : index
      %c0_52 = arith.constant 0 : index
      %c0_53 = arith.constant 0 : index
      %86 = vector.load %arg4[%c0_50, %c0_51, %c0_52, %c0_53] : memref<1x3x8x128xf32, #tpu.memory_space<vmem>>, vector<1x3x8x128xf32>
      %87 = vector.shape_cast %86 : vector<1x3x8x128xf32> to vector<3x8x128xf32>
      %88 = vector.shape_cast %85 : vector<3x8x128xf32> to vector<1x3x8x128xf32>
      tpu.vector_store %arg4[%c0_50, %c0_51, %c0_52, %c0_53], %88 {strides = array<i32>} : memref<1x3x8x128xf32, #tpu.memory_space<vmem>>, vector<1x3x8x128xf32>,
    } else {
    }
    %c0 = arith.constant 0 : index
    %c0_1 = arith.constant 0 : index
    %3 = vector.load %arg2[%c0, %c0_1] : memref<16x128xf32, #tpu.memory_space<vmem>>, vector<16x128xf32>
    %c0_2 = arith.constant 0 : index
    %c0_3 = arith.constant 0 : index
    %4 = vector.load %arg3[%c0_2, %c0_3] : memref<16x128xf32, #tpu.memory_space<vmem>>, vector<16x128xf32>
    %5 = math.absf %3 : vector<16x128xf32>
    %cst = arith.constant 0.000000e+00 : f32
    %6 = vector.broadcast %cst : f32 to vector<16x128xf32>
    %7 = arith.subf %6, %5 : vector<16x128xf32>
    %8 = math.exp %7 : vector<16x128xf32>
    %cst_4 = arith.constant 1.000000e+00 : f32
    %9 = vector.broadcast %cst_4 : f32 to vector<16x128xf32>
    %10 = arith.addf %9, %8 : vector<16x128xf32>
    %11 = math.log %10 : vector<16x128xf32>
    %cst_5 = arith.constant 1.000000e+00 : f32
    %12 = vector.broadcast %cst_5 : f32 to vector<16x128xf32>
    %13 = arith.addf %12, %8 : vector<16x128xf32>
    %14 = tpu.reciprocal %13 : vector<16x128xf32> -> vector<16x128xf32>
    %cst_6 = arith.constant 0.000000e+00 : f32
    %15 = vector.broadcast %cst_6 : f32 to vector<16x128xf32>
    %16 = arith.cmpf oge, %3, %15 : vector<16x128xf32>
    %17 = arith.mulf %8, %14 : vector<16x128xf32>
    %18 = arith.select %16, %14, %17 : vector<16x128xi1>, vector<16x128xf32>
    %cst_7 = arith.constant 9.99999974E-5 : f32
    %cst_8 = arith.constant 0.999899983 : f32
    %19 = vector.broadcast %cst_7 : f32 to vector<16x128xf32>
    %20 = arith.maximumf %19, %18 : vector<16x128xf32>
    %21 = vector.broadcast %cst_8 : f32 to vector<16x128xf32>
    %22 = arith.minimumf %21, %20 : vector<16x128xf32>
    %cst_9 = arith.constant 0.000000e+00 : f32
    %23 = vector.broadcast %cst_9 : f32 to vector<16x128xf32>
    %24 = arith.minimumf %3, %23 : vector<16x128xf32>
    %25 = arith.subf %24, %11 : vector<16x128xf32>
    %cst_10 = arith.constant -9.21034049 : f32
    %cst_11 = arith.constant -1.000050e-04 : f32
    %26 = vector.broadcast %cst_10 : f32 to vector<16x128xf32>
    %27 = arith.maximumf %26, %25 : vector<16x128xf32>
    %28 = vector.broadcast %cst_11 : f32 to vector<16x128xf32>
    %29 = arith.minimumf %28, %27 : vector<16x128xf32>
    %cst_12 = arith.constant 0.000000e+00 : f32
    %30 = vector.broadcast %cst_12 : f32 to vector<16x128xf32>
    %31 = arith.subf %30, %3 : vector<16x128xf32>
    %cst_13 = arith.constant 0.000000e+00 : f32
    %32 = vector.broadcast %cst_13 : f32 to vector<16x128xf32>
    %33 = arith.minimumf %31, %32 : vector<16x128xf32>
    %34 = arith.subf %33, %11 : vector<16x128xf32>
    %cst_14 = arith.constant -9.21034049 : f32
    %cst_15 = arith.constant -1.000050e-04 : f32
    %35 = vector.broadcast %cst_14 : f32 to vector<16x128xf32>
    %36 = arith.maximumf %35, %34 : vector<16x128xf32>
    %37 = vector.broadcast %cst_15 : f32 to vector<16x128xf32>
    %38 = arith.minimumf %37, %36 : vector<16x128xf32>
    %cst_16 = arith.constant 1.000000e+00 : f32
    %39 = vector.broadcast %cst_16 : f32 to vector<16x128xf32>
    %40 = arith.subf %39, %4 : vector<16x128xf32>
    %41 = arith.mulf %40, %40 : vector<16x128xf32>
    %42 = arith.mulf %41, %41 : vector<16x128xf32>
    %cst_17 = arith.constant 1.000000e+00 : f32
    %43 = vector.broadcast %cst_17 : f32 to vector<16x128xf32>
    %44 = arith.subf %43, %22 : vector<16x128xf32>
    %cst_18 = arith.constant 1.000000e+00 : f32
    %45 = vector.broadcast %cst_18 : f32 to vector<16x128xf32>
    %46 = arith.cmpf oeq, %4, %45 : vector<16x128xf32>
    %47 = arith.mulf %44, %44 : vector<16x128xf32>
    %48 = arith.mulf %29, %47 : vector<16x128xf32>
    %cst_19 = arith.constant 0.000000e+00 : f32
    %49 = vector.broadcast %cst_19 : f32 to vector<16x128xf32>
    %50 = arith.select %46, %48, %49 : vector<16x128xi1>, vector<16x128xf32>
    %cst_20 = arith.constant 1.000000e+00 : f32
    %51 = vector.broadcast %cst_20 : f32 to vector<16x128xf32>
    %52 = arith.cmpf olt, %4, %51 : vector<16x128xf32>
    %53 = arith.mulf %22, %22 : vector<16x128xf32>
    %54 = arith.mulf %38, %53 : vector<16x128xf32>
    %55 = arith.mulf %54, %42 : vector<16x128xf32>
    %cst_21 = arith.constant 0.000000e+00 : f32
    %56 = vector.broadcast %cst_21 : f32 to vector<16x128xf32>
    %57 = arith.select %52, %55, %56 : vector<16x128xi1>, vector<16x128xf32>
    %cst_22 = arith.constant 1.000000e+00 : f32
    %cst_23 = arith.constant 0.000000e+00 : f32
    %58 = vector.broadcast %cst_22 : f32 to vector<16x128xf32>
    %59 = vector.broadcast %cst_23 : f32 to vector<16x128xf32>
    %60 = arith.select %46, %58, %59 : vector<16x128xi1>, vector<16x128xf32>
    %c0_24 = arith.constant 0 : index
    %c0_25 = arith.constant 0 : index
    %c0_26 = arith.constant 0 : index
    %c0_27 = arith.constant 0 : index
    %61 = vector.load %arg4[%c0_24, %c0_25, %c0_26, %c0_27] : memref<1x3x8x128xf32, #tpu.memory_space<vmem>>, vector<1x1x8x128xf32>
    %62 = vector.shape_cast %61 : vector<1x1x8x128xf32> to vector<8x128xf32>
    %63 = vector.shape_cast %50 : vector<16x128xf32> to vector<2x8x128xf32>
    %cst_28 = arith.constant dense<0.000000e+00> : vector<8x128xf32>
    %64 = vector.multi_reduction <add>, %63, %cst_28 [0] : vector<2x8x128xf32> to vector<8x128xf32>
    %65 = arith.addf %62, %64 : vector<8x128xf32>
    %c0_29 = arith.constant 0 : index
    %c0_30 = arith.constant 0 : index
    %c0_31 = arith.constant 0 : index
    %c0_32 = arith.constant 0 : index
    %66 = vector.load %arg4[%c0_29, %c0_30, %c0_31, %c0_32] : memref<1x3x8x128xf32, #tpu.memory_space<vmem>>, vector<1x1x8x128xf32>
    %67 = vector.shape_cast %66 : vector<1x1x8x128xf32> to vector<8x128xf32>
    %68 = vector.shape_cast %65 : vector<8x128xf32> to vector<1x1x8x128xf32>
    tpu.vector_store %arg4[%c0_29, %c0_30, %c0_31, %c0_32], %68 {strides = array<i32>} : memref<1x3x8x128xf32, #tpu.memory_space<vmem>>, vector<1x1x8x128xf32>,
    %c0_33 = arith.constant 0 : index
    %c1 = arith.constant 1 : index
    %c0_34 = arith.constant 0 : index
    %c0_35 = arith.constant 0 : index
    %69 = vector.load %arg4[%c0_33, %c1, %c0_34, %c0_35] : memref<1x3x8x128xf32, #tpu.memory_space<vmem>>, vector<1x1x8x128xf32>
    %70 = vector.shape_cast %69 : vector<1x1x8x128xf32> to vector<8x128xf32>
    %71 = vector.shape_cast %57 : vector<16x128xf32> to vector<2x8x128xf32>
    %cst_36 = arith.constant dense<0.000000e+00> : vector<8x128xf32>
    %72 = vector.multi_reduction <add>, %71, %cst_36 [0] : vector<2x8x128xf32> to vector<8x128xf32>
    %73 = arith.addf %70, %72 : vector<8x128xf32>
    %c0_37 = arith.constant 0 : index
    %c1_38 = arith.constant 1 : index
    %c0_39 = arith.constant 0 : index
    %c0_40 = arith.constant 0 : index
    %74 = vector.load %arg4[%c0_37, %c1_38, %c0_39, %c0_40] : memref<1x3x8x128xf32, #tpu.memory_space<vmem>>, vector<1x1x8x128xf32>
    %75 = vector.shape_cast %74 : vector<1x1x8x128xf32> to vector<8x128xf32>
    %76 = vector.shape_cast %73 : vector<8x128xf32> to vector<1x1x8x128xf32>
    tpu.vector_store %arg4[%c0_37, %c1_38, %c0_39, %c0_40], %76 {strides = array<i32>} : memref<1x3x8x128xf32, #tpu.memory_space<vmem>>, vector<1x1x8x128xf32>,
    %c0_41 = arith.constant 0 : index
    %c2 = arith.constant 2 : index
    %c0_42 = arith.constant 0 : index
    %c0_43 = arith.constant 0 : index
    %77 = vector.load %arg4[%c0_41, %c2, %c0_42, %c0_43] : memref<1x3x8x128xf32, #tpu.memory_space<vmem>>, vector<1x1x8x128xf32>
    %78 = vector.shape_cast %77 : vector<1x1x8x128xf32> to vector<8x128xf32>
    %79 = vector.shape_cast %60 : vector<16x128xf32> to vector<2x8x128xf32>
    %cst_44 = arith.constant dense<0.000000e+00> : vector<8x128xf32>
    %80 = vector.multi_reduction <add>, %79, %cst_44 [0] : vector<2x8x128xf32> to vector<8x128xf32>
    %81 = arith.addf %78, %80 : vector<8x128xf32>
    %c0_45 = arith.constant 0 : index
    %c2_46 = arith.constant 2 : index
    %c0_47 = arith.constant 0 : index
    %c0_48 = arith.constant 0 : index
    %82 = vector.load %arg4[%c0_45, %c2_46, %c0_47, %c0_48] : memref<1x3x8x128xf32, #tpu.memory_space<vmem>>, vector<1x1x8x128xf32>
    %83 = vector.shape_cast %82 : vector<1x1x8x128xf32> to vector<8x128xf32>
    %84 = vector.shape_cast %81 : vector<8x128xf32> to vector<1x1x8x128xf32>
    tpu.vector_store %arg4[%c0_45, %c2_46, %c0_47, %c0_48], %84 {strides = array<i32>} : memref<1x3x8x128xf32, #tpu.memory_space<vmem>>, vector<1x1x8x128xf32>,
    return
  }
  func.func @transform_0(%arg0: i32, %arg1: i32) -> (i32, i32) {
    %c1_i32 = arith.constant 1 : i32
    %0 = arith.muli %arg0, %c1_i32 : i32
    %1 = arith.addi %0, %arg1 : i32
    %c0_i32 = arith.constant 0 : i32
    %c0_i32_0 = arith.constant 0 : i32
    return %1, %c0_i32 : i32, i32
  }
  func.func @transform_1(%arg0: i32, %arg1: i32) -> (i32, i32) {
    %c1_i32 = arith.constant 1 : i32
    %0 = arith.muli %arg0, %c1_i32 : i32
    %1 = arith.addi %0, %arg1 : i32
    %c0_i32 = arith.constant 0 : i32
    %c0_i32_0 = arith.constant 0 : i32
    return %1, %c0_i32 : i32, i32
  }
  func.func @transform_2(%arg0: i32, %arg1: i32) -> (i32, i32, i32, i32) {
    %c0_i32 = arith.constant 0 : i32
    %c0_i32_0 = arith.constant 0 : i32
    %c0_i32_1 = arith.constant 0 : i32
    %c0_i32_2 = arith.constant 0 : i32
    return %arg0, %c0_i32, %c0_i32_0, %c0_i32_1 : i32, i32, i32, i32
  }
}

module attributes {stable_mosaic.version = 11 : i64} {
  func.func @kernel(%arg0: i32, %arg1: memref<8x8x128xf32, #tpu.memory_space<vmem>>, %arg2: memref<8x128xf32, #tpu.memory_space<vmem>>, %arg3: memref<8x128xf32, #tpu.memory_space<vmem>>, %arg4: memref<8xf32, #tpu.memory_space<smem>>) attributes {dimension_semantics = [#tpu.dimension_semantics<arbitrary>], iteration_bounds = array<i64: 1>, scalar_prefetch = 0 : i64, scratch_operands = 0 : i64, tpu.core_type = #tpu.core_type<tc>, window_params = [{transform_indices = @transform_0, window_bounds = array<i64: 8, 8, 128>}, {transform_indices = @transform_1, window_bounds = array<i64: 8, 128>}, {transform_indices = @transform_2, window_bounds = array<i64: 8, 128>}, {transform_indices = @transform_3, window_bounds = array<i64: 8>}]} {
    %c0_i32 = arith.constant 0 : i32
    %0 = arith.cmpi eq, %arg0, %c0_i32 : i32
    %1 = arith.extui %0 : i1 to i32
    %c0_i32_0 = arith.constant 0 : i32
    %2 = arith.cmpi ne, %1, %c0_i32_0 : i32
    scf.if %2 {
      %cst_68 = arith.constant 0.000000e+00 : f32
      %c0_69 = arith.constant 0 : index
      %157 = memref.load %arg4[%c0_69] : memref<8xf32, #tpu.memory_space<smem>>
      memref.store %cst_68, %arg4[%c0_69] : memref<8xf32, #tpu.memory_space<smem>>
      %cst_70 = arith.constant 0.000000e+00 : f32
      %c1_71 = arith.constant 1 : index
      %158 = memref.load %arg4[%c1_71] : memref<8xf32, #tpu.memory_space<smem>>
      memref.store %cst_70, %arg4[%c1_71] : memref<8xf32, #tpu.memory_space<smem>>
      %cst_72 = arith.constant 0.000000e+00 : f32
      %c2_73 = arith.constant 2 : index
      %159 = memref.load %arg4[%c2_73] : memref<8xf32, #tpu.memory_space<smem>>
      memref.store %cst_72, %arg4[%c2_73] : memref<8xf32, #tpu.memory_space<smem>>
      %cst_74 = arith.constant 0.000000e+00 : f32
      %c3_75 = arith.constant 3 : index
      %160 = memref.load %arg4[%c3_75] : memref<8xf32, #tpu.memory_space<smem>>
      memref.store %cst_74, %arg4[%c3_75] : memref<8xf32, #tpu.memory_space<smem>>
      %cst_76 = arith.constant 0.000000e+00 : f32
      %c4_77 = arith.constant 4 : index
      %161 = memref.load %arg4[%c4_77] : memref<8xf32, #tpu.memory_space<smem>>
      memref.store %cst_76, %arg4[%c4_77] : memref<8xf32, #tpu.memory_space<smem>>
      %cst_78 = arith.constant 0.000000e+00 : f32
      %c5_79 = arith.constant 5 : index
      %162 = memref.load %arg4[%c5_79] : memref<8xf32, #tpu.memory_space<smem>>
      memref.store %cst_78, %arg4[%c5_79] : memref<8xf32, #tpu.memory_space<smem>>
      %cst_80 = arith.constant 0.000000e+00 : f32
      %c6_81 = arith.constant 6 : index
      %163 = memref.load %arg4[%c6_81] : memref<8xf32, #tpu.memory_space<smem>>
      memref.store %cst_80, %arg4[%c6_81] : memref<8xf32, #tpu.memory_space<smem>>
      %cst_82 = arith.constant 0.000000e+00 : f32
      %c7_83 = arith.constant 7 : index
      %164 = memref.load %arg4[%c7_83] : memref<8xf32, #tpu.memory_space<smem>>
      memref.store %cst_82, %arg4[%c7_83] : memref<8xf32, #tpu.memory_space<smem>>
    } else {
    }
    %c0 = arith.constant 0 : index
    %c0_1 = arith.constant 0 : index
    %3 = vector.load %arg2[%c0, %c0_1] : memref<8x128xf32, #tpu.memory_space<vmem>>, vector<8x128xf32>
    %c0_2 = arith.constant 0 : index
    %c0_3 = arith.constant 0 : index
    %4 = vector.load %arg3[%c0_2, %c0_3] : memref<8x128xf32, #tpu.memory_space<vmem>>, vector<8x128xf32>
    %c0_4 = arith.constant 0 : index
    %c0_5 = arith.constant 0 : index
    %c0_6 = arith.constant 0 : index
    %5 = vector.load %arg1[%c0_4, %c0_5, %c0_6] : memref<8x8x128xf32, #tpu.memory_space<vmem>>, vector<1x8x128xf32>
    %6 = vector.shape_cast %5 : vector<1x8x128xf32> to vector<8x128xf32>
    %7 = arith.subf %6, %3 : vector<8x128xf32>
    %8 = math.absf %7 : vector<8x128xf32>
    %cst = arith.constant 1.000000e+00 : f32
    %9 = vector.broadcast %cst : f32 to vector<8x128xf32>
    %10 = arith.cmpf olt, %8, %9 : vector<8x128xf32>
    %cst_7 = arith.constant 5.000000e-01 : f32
    %11 = vector.broadcast %cst_7 : f32 to vector<8x128xf32>
    %12 = arith.mulf %11, %8 : vector<8x128xf32>
    %13 = arith.mulf %12, %8 : vector<8x128xf32>
    %cst_8 = arith.constant 5.000000e-01 : f32
    %14 = vector.broadcast %cst_8 : f32 to vector<8x128xf32>
    %15 = arith.subf %8, %14 : vector<8x128xf32>
    %16 = arith.select %10, %13, %15 : vector<8x128xi1>, vector<8x128xf32>
    %c0_9 = arith.constant 0 : index
    %17 = memref.load %arg4[%c0_9] : memref<8xf32, #tpu.memory_space<smem>>
    %18 = vector.shape_cast %16 : vector<8x128xf32> to vector<1x8x128xf32>
    %cst_10 = arith.constant dense<0.000000e+00> : vector<1xf32>
    %19 = vector.multi_reduction <add>, %18, %cst_10 [1, 2] : vector<1x8x128xf32> to vector<1xf32>
    %20 = vector.shape_cast %19 : vector<1xf32> to vector<1x1x1xf32>
    %21 = vector.extract %20[0, 0, 0] : f32 from vector<1x1x1xf32>
    %22 = arith.addf %17, %21 : f32
    %c0_11 = arith.constant 0 : index
    %23 = memref.load %arg4[%c0_11] : memref<8xf32, #tpu.memory_space<smem>>
    memref.store %22, %arg4[%c0_11] : memref<8xf32, #tpu.memory_space<smem>>
    %c1 = arith.constant 1 : index
    %c0_12 = arith.constant 0 : index
    %c0_13 = arith.constant 0 : index
    %24 = vector.load %arg1[%c1, %c0_12, %c0_13] : memref<8x8x128xf32, #tpu.memory_space<vmem>>, vector<1x8x128xf32>
    %25 = vector.shape_cast %24 : vector<1x8x128xf32> to vector<8x128xf32>
    %26 = arith.subf %25, %3 : vector<8x128xf32>
    %27 = math.absf %26 : vector<8x128xf32>
    %cst_14 = arith.constant 1.000000e+00 : f32
    %28 = vector.broadcast %cst_14 : f32 to vector<8x128xf32>
    %29 = arith.cmpf olt, %27, %28 : vector<8x128xf32>
    %cst_15 = arith.constant 5.000000e-01 : f32
    %30 = vector.broadcast %cst_15 : f32 to vector<8x128xf32>
    %31 = arith.mulf %30, %27 : vector<8x128xf32>
    %32 = arith.mulf %31, %27 : vector<8x128xf32>
    %cst_16 = arith.constant 5.000000e-01 : f32
    %33 = vector.broadcast %cst_16 : f32 to vector<8x128xf32>
    %34 = arith.subf %27, %33 : vector<8x128xf32>
    %35 = arith.select %29, %32, %34 : vector<8x128xi1>, vector<8x128xf32>
    %c1_17 = arith.constant 1 : index
    %36 = memref.load %arg4[%c1_17] : memref<8xf32, #tpu.memory_space<smem>>
    %37 = vector.shape_cast %35 : vector<8x128xf32> to vector<1x8x128xf32>
    %cst_18 = arith.constant dense<0.000000e+00> : vector<1xf32>
    %38 = vector.multi_reduction <add>, %37, %cst_18 [1, 2] : vector<1x8x128xf32> to vector<1xf32>
    %39 = vector.shape_cast %38 : vector<1xf32> to vector<1x1x1xf32>
    %40 = vector.extract %39[0, 0, 0] : f32 from vector<1x1x1xf32>
    %41 = arith.addf %36, %40 : f32
    %c1_19 = arith.constant 1 : index
    %42 = memref.load %arg4[%c1_19] : memref<8xf32, #tpu.memory_space<smem>>
    memref.store %41, %arg4[%c1_19] : memref<8xf32, #tpu.memory_space<smem>>
    %c2 = arith.constant 2 : index
    %c0_20 = arith.constant 0 : index
    %c0_21 = arith.constant 0 : index
    %43 = vector.load %arg1[%c2, %c0_20, %c0_21] : memref<8x8x128xf32, #tpu.memory_space<vmem>>, vector<1x8x128xf32>
    %44 = vector.shape_cast %43 : vector<1x8x128xf32> to vector<8x128xf32>
    %45 = arith.subf %44, %3 : vector<8x128xf32>
    %46 = math.absf %45 : vector<8x128xf32>
    %cst_22 = arith.constant 1.000000e+00 : f32
    %47 = vector.broadcast %cst_22 : f32 to vector<8x128xf32>
    %48 = arith.cmpf olt, %46, %47 : vector<8x128xf32>
    %cst_23 = arith.constant 5.000000e-01 : f32
    %49 = vector.broadcast %cst_23 : f32 to vector<8x128xf32>
    %50 = arith.mulf %49, %46 : vector<8x128xf32>
    %51 = arith.mulf %50, %46 : vector<8x128xf32>
    %cst_24 = arith.constant 5.000000e-01 : f32
    %52 = vector.broadcast %cst_24 : f32 to vector<8x128xf32>
    %53 = arith.subf %46, %52 : vector<8x128xf32>
    %54 = arith.select %48, %51, %53 : vector<8x128xi1>, vector<8x128xf32>
    %c2_25 = arith.constant 2 : index
    %55 = memref.load %arg4[%c2_25] : memref<8xf32, #tpu.memory_space<smem>>
    %56 = vector.shape_cast %54 : vector<8x128xf32> to vector<1x8x128xf32>
    %cst_26 = arith.constant dense<0.000000e+00> : vector<1xf32>
    %57 = vector.multi_reduction <add>, %56, %cst_26 [1, 2] : vector<1x8x128xf32> to vector<1xf32>
    %58 = vector.shape_cast %57 : vector<1xf32> to vector<1x1x1xf32>
    %59 = vector.extract %58[0, 0, 0] : f32 from vector<1x1x1xf32>
    %60 = arith.addf %55, %59 : f32
    %c2_27 = arith.constant 2 : index
    %61 = memref.load %arg4[%c2_27] : memref<8xf32, #tpu.memory_space<smem>>
    memref.store %60, %arg4[%c2_27] : memref<8xf32, #tpu.memory_space<smem>>
    %c3 = arith.constant 3 : index
    %c0_28 = arith.constant 0 : index
    %c0_29 = arith.constant 0 : index
    %62 = vector.load %arg1[%c3, %c0_28, %c0_29] : memref<8x8x128xf32, #tpu.memory_space<vmem>>, vector<1x8x128xf32>
    %63 = vector.shape_cast %62 : vector<1x8x128xf32> to vector<8x128xf32>
    %64 = arith.subf %63, %3 : vector<8x128xf32>
    %65 = math.absf %64 : vector<8x128xf32>
    %cst_30 = arith.constant 1.000000e+00 : f32
    %66 = vector.broadcast %cst_30 : f32 to vector<8x128xf32>
    %67 = arith.cmpf olt, %65, %66 : vector<8x128xf32>
    %cst_31 = arith.constant 5.000000e-01 : f32
    %68 = vector.broadcast %cst_31 : f32 to vector<8x128xf32>
    %69 = arith.mulf %68, %65 : vector<8x128xf32>
    %70 = arith.mulf %69, %65 : vector<8x128xf32>
    %cst_32 = arith.constant 5.000000e-01 : f32
    %71 = vector.broadcast %cst_32 : f32 to vector<8x128xf32>
    %72 = arith.subf %65, %71 : vector<8x128xf32>
    %73 = arith.select %67, %70, %72 : vector<8x128xi1>, vector<8x128xf32>
    %c3_33 = arith.constant 3 : index
    %74 = memref.load %arg4[%c3_33] : memref<8xf32, #tpu.memory_space<smem>>
    %75 = vector.shape_cast %73 : vector<8x128xf32> to vector<1x8x128xf32>
    %cst_34 = arith.constant dense<0.000000e+00> : vector<1xf32>
    %76 = vector.multi_reduction <add>, %75, %cst_34 [1, 2] : vector<1x8x128xf32> to vector<1xf32>
    %77 = vector.shape_cast %76 : vector<1xf32> to vector<1x1x1xf32>
    %78 = vector.extract %77[0, 0, 0] : f32 from vector<1x1x1xf32>
    %79 = arith.addf %74, %78 : f32
    %c3_35 = arith.constant 3 : index
    %80 = memref.load %arg4[%c3_35] : memref<8xf32, #tpu.memory_space<smem>>
    memref.store %79, %arg4[%c3_35] : memref<8xf32, #tpu.memory_space<smem>>
    %c4 = arith.constant 4 : index
    %c0_36 = arith.constant 0 : index
    %c0_37 = arith.constant 0 : index
    %81 = vector.load %arg1[%c4, %c0_36, %c0_37] : memref<8x8x128xf32, #tpu.memory_space<vmem>>, vector<1x8x128xf32>
    %82 = vector.shape_cast %81 : vector<1x8x128xf32> to vector<8x128xf32>
    %83 = arith.subf %82, %3 : vector<8x128xf32>
    %84 = math.absf %83 : vector<8x128xf32>
    %cst_38 = arith.constant 1.000000e+00 : f32
    %85 = vector.broadcast %cst_38 : f32 to vector<8x128xf32>
    %86 = arith.cmpf olt, %84, %85 : vector<8x128xf32>
    %cst_39 = arith.constant 5.000000e-01 : f32
    %87 = vector.broadcast %cst_39 : f32 to vector<8x128xf32>
    %88 = arith.mulf %87, %84 : vector<8x128xf32>
    %89 = arith.mulf %88, %84 : vector<8x128xf32>
    %cst_40 = arith.constant 5.000000e-01 : f32
    %90 = vector.broadcast %cst_40 : f32 to vector<8x128xf32>
    %91 = arith.subf %84, %90 : vector<8x128xf32>
    %92 = arith.select %86, %89, %91 : vector<8x128xi1>, vector<8x128xf32>
    %c4_41 = arith.constant 4 : index
    %93 = memref.load %arg4[%c4_41] : memref<8xf32, #tpu.memory_space<smem>>
    %94 = vector.shape_cast %92 : vector<8x128xf32> to vector<1x8x128xf32>
    %cst_42 = arith.constant dense<0.000000e+00> : vector<1xf32>
    %95 = vector.multi_reduction <add>, %94, %cst_42 [1, 2] : vector<1x8x128xf32> to vector<1xf32>
    %96 = vector.shape_cast %95 : vector<1xf32> to vector<1x1x1xf32>
    %97 = vector.extract %96[0, 0, 0] : f32 from vector<1x1x1xf32>
    %98 = arith.addf %93, %97 : f32
    %c4_43 = arith.constant 4 : index
    %99 = memref.load %arg4[%c4_43] : memref<8xf32, #tpu.memory_space<smem>>
    memref.store %98, %arg4[%c4_43] : memref<8xf32, #tpu.memory_space<smem>>
    %c5 = arith.constant 5 : index
    %c0_44 = arith.constant 0 : index
    %c0_45 = arith.constant 0 : index
    %100 = vector.load %arg1[%c5, %c0_44, %c0_45] : memref<8x8x128xf32, #tpu.memory_space<vmem>>, vector<1x8x128xf32>
    %101 = vector.shape_cast %100 : vector<1x8x128xf32> to vector<8x128xf32>
    %102 = arith.subf %101, %4 : vector<8x128xf32>
    %103 = math.absf %102 : vector<8x128xf32>
    %cst_46 = arith.constant 1.000000e+00 : f32
    %104 = vector.broadcast %cst_46 : f32 to vector<8x128xf32>
    %105 = arith.cmpf olt, %103, %104 : vector<8x128xf32>
    %cst_47 = arith.constant 5.000000e-01 : f32
    %106 = vector.broadcast %cst_47 : f32 to vector<8x128xf32>
    %107 = arith.mulf %106, %103 : vector<8x128xf32>
    %108 = arith.mulf %107, %103 : vector<8x128xf32>
    %cst_48 = arith.constant 5.000000e-01 : f32
    %109 = vector.broadcast %cst_48 : f32 to vector<8x128xf32>
    %110 = arith.subf %103, %109 : vector<8x128xf32>
    %111 = arith.select %105, %108, %110 : vector<8x128xi1>, vector<8x128xf32>
    %c5_49 = arith.constant 5 : index
    %112 = memref.load %arg4[%c5_49] : memref<8xf32, #tpu.memory_space<smem>>
    %113 = vector.shape_cast %111 : vector<8x128xf32> to vector<1x8x128xf32>
    %cst_50 = arith.constant dense<0.000000e+00> : vector<1xf32>
    %114 = vector.multi_reduction <add>, %113, %cst_50 [1, 2] : vector<1x8x128xf32> to vector<1xf32>
    %115 = vector.shape_cast %114 : vector<1xf32> to vector<1x1x1xf32>
    %116 = vector.extract %115[0, 0, 0] : f32 from vector<1x1x1xf32>
    %117 = arith.addf %112, %116 : f32
    %c5_51 = arith.constant 5 : index
    %118 = memref.load %arg4[%c5_51] : memref<8xf32, #tpu.memory_space<smem>>
    memref.store %117, %arg4[%c5_51] : memref<8xf32, #tpu.memory_space<smem>>
    %c6 = arith.constant 6 : index
    %c0_52 = arith.constant 0 : index
    %c0_53 = arith.constant 0 : index
    %119 = vector.load %arg1[%c6, %c0_52, %c0_53] : memref<8x8x128xf32, #tpu.memory_space<vmem>>, vector<1x8x128xf32>
    %120 = vector.shape_cast %119 : vector<1x8x128xf32> to vector<8x128xf32>
    %121 = arith.subf %120, %4 : vector<8x128xf32>
    %122 = math.absf %121 : vector<8x128xf32>
    %cst_54 = arith.constant 1.000000e+00 : f32
    %123 = vector.broadcast %cst_54 : f32 to vector<8x128xf32>
    %124 = arith.cmpf olt, %122, %123 : vector<8x128xf32>
    %cst_55 = arith.constant 5.000000e-01 : f32
    %125 = vector.broadcast %cst_55 : f32 to vector<8x128xf32>
    %126 = arith.mulf %125, %122 : vector<8x128xf32>
    %127 = arith.mulf %126, %122 : vector<8x128xf32>
    %cst_56 = arith.constant 5.000000e-01 : f32
    %128 = vector.broadcast %cst_56 : f32 to vector<8x128xf32>
    %129 = arith.subf %122, %128 : vector<8x128xf32>
    %130 = arith.select %124, %127, %129 : vector<8x128xi1>, vector<8x128xf32>
    %c6_57 = arith.constant 6 : index
    %131 = memref.load %arg4[%c6_57] : memref<8xf32, #tpu.memory_space<smem>>
    %132 = vector.shape_cast %130 : vector<8x128xf32> to vector<1x8x128xf32>
    %cst_58 = arith.constant dense<0.000000e+00> : vector<1xf32>
    %133 = vector.multi_reduction <add>, %132, %cst_58 [1, 2] : vector<1x8x128xf32> to vector<1xf32>
    %134 = vector.shape_cast %133 : vector<1xf32> to vector<1x1x1xf32>
    %135 = vector.extract %134[0, 0, 0] : f32 from vector<1x1x1xf32>
    %136 = arith.addf %131, %135 : f32
    %c6_59 = arith.constant 6 : index
    %137 = memref.load %arg4[%c6_59] : memref<8xf32, #tpu.memory_space<smem>>
    memref.store %136, %arg4[%c6_59] : memref<8xf32, #tpu.memory_space<smem>>
    %c7 = arith.constant 7 : index
    %c0_60 = arith.constant 0 : index
    %c0_61 = arith.constant 0 : index
    %138 = vector.load %arg1[%c7, %c0_60, %c0_61] : memref<8x8x128xf32, #tpu.memory_space<vmem>>, vector<1x8x128xf32>
    %139 = vector.shape_cast %138 : vector<1x8x128xf32> to vector<8x128xf32>
    %140 = arith.subf %139, %4 : vector<8x128xf32>
    %141 = math.absf %140 : vector<8x128xf32>
    %cst_62 = arith.constant 1.000000e+00 : f32
    %142 = vector.broadcast %cst_62 : f32 to vector<8x128xf32>
    %143 = arith.cmpf olt, %141, %142 : vector<8x128xf32>
    %cst_63 = arith.constant 5.000000e-01 : f32
    %144 = vector.broadcast %cst_63 : f32 to vector<8x128xf32>
    %145 = arith.mulf %144, %141 : vector<8x128xf32>
    %146 = arith.mulf %145, %141 : vector<8x128xf32>
    %cst_64 = arith.constant 5.000000e-01 : f32
    %147 = vector.broadcast %cst_64 : f32 to vector<8x128xf32>
    %148 = arith.subf %141, %147 : vector<8x128xf32>
    %149 = arith.select %143, %146, %148 : vector<8x128xi1>, vector<8x128xf32>
    %c7_65 = arith.constant 7 : index
    %150 = memref.load %arg4[%c7_65] : memref<8xf32, #tpu.memory_space<smem>>
    %151 = vector.shape_cast %149 : vector<8x128xf32> to vector<1x8x128xf32>
    %cst_66 = arith.constant dense<0.000000e+00> : vector<1xf32>
    %152 = vector.multi_reduction <add>, %151, %cst_66 [1, 2] : vector<1x8x128xf32> to vector<1xf32>
    %153 = vector.shape_cast %152 : vector<1xf32> to vector<1x1x1xf32>
    %154 = vector.extract %153[0, 0, 0] : f32 from vector<1x1x1xf32>
    %155 = arith.addf %150, %154 : f32
    %c7_67 = arith.constant 7 : index
    %156 = memref.load %arg4[%c7_67] : memref<8xf32, #tpu.memory_space<smem>>
    memref.store %155, %arg4[%c7_67] : memref<8xf32, #tpu.memory_space<smem>>
    return
  }
  func.func @transform_0(%arg0: i32) -> (i32, i32, i32) {
    %c0_i32 = arith.constant 0 : i32
    %c0_i32_0 = arith.constant 0 : i32
    %c0_i32_1 = arith.constant 0 : i32
    return %c0_i32, %arg0, %c0_i32_0 : i32, i32, i32
  }
  func.func @transform_1(%arg0: i32) -> (i32, i32) {
    %c0_i32 = arith.constant 0 : i32
    %c0_i32_0 = arith.constant 0 : i32
    return %arg0, %c0_i32 : i32, i32
  }
  func.func @transform_2(%arg0: i32) -> (i32, i32) {
    %c0_i32 = arith.constant 0 : i32
    %c0_i32_0 = arith.constant 0 : i32
    return %arg0, %c0_i32 : i32, i32
  }
  func.func @transform_3(%arg0: i32) -> i32 {
    %c0_i32 = arith.constant 0 : i32
    %c0_i32_0 = arith.constant 0 : i32
    return %c0_i32 : i32
  }
}

</mosaic_0001>

<bundles_post_ra>
// kernel: fn.2
= control target key start
LH: loop header
LB: loop body
LE: loop exit
PB: predicated region body
PF: predicated region fallthrough
CT: control target
= control target key end

     0   :  { %v185_v10 = vmov 0.0   ;;  %s240_s0 = inlined_call_operand.vmem [shape: f32[16,128], index: 0, kind: input, shape index: {}]   ;;  %s241_s1 = inlined_call_operand.vmem [shape: f32[16,128], index: 1, kind: input, shape index: {}]   ;;  %s242_s2 = inlined_call_operand.vmem [shape: f32[1,3,8,128], index: 2, kind: output, shape index: {}]  }
   0x1   :  { %v62_v0 = vld [vmem:[%s240_s0] sm:$0xff]  ;;  %v63_v1 = vld [vmem:[%s240_s0 + $0x8] sm:$0xff] }
   0x2   :  { %v66_v2 = vand.u32 2147483647, %v62_v0  ;;  %v67_v3 = vand.u32 2147483647, %v63_v1  ;;  %v210_v4 = vld [vmem:[%s241_s1] sm:$0xff]  ;;  %v215_v5 = vld [vmem:[%s241_s1 + $0x8] sm:$0xff] }
   0x3   :  { %vm118_vm0 = vcmp.eq.f32.partialorder %v210_v4, 1.0  ;;  %vm119_vm1 = vcmp.eq.f32.partialorder %v215_v5, 1.0  ;;  %v100_v18 = vsub.f32 0.0, %v62_v0  ;;  %v101_v19 = vsub.f32 0.0, %v63_v1 }
   0x4   :  { %v68_v6 = vsub.f32 0.0, %v66_v2  ;;  %v69_v7 = vsub.f32 0.0, %v67_v3  ;;  %v136_v11 = vsel %vm118_vm0, 1.0, %v185_v10  ;;  %v137_v12 = vsel %vm119_vm1, 1.0, %v185_v10 }
   0x5   :  { %v149_v13 = vadd.f32 %v137_v12, %v136_v11  ;;  %v92_v20 = vmin.f32 %v62_v0, 0.0  ;;  %v102_v21 = vmin.f32 %v100_v18, 0.0  ;;  %v93_v23 = vmin.f32 %v63_v1, 0.0 }
   0x6   :  { %v70_v8 = vmul.f32 1.442695, %v68_v6  ;;  %v72_v9 = vmul.f32 1.442695, %v69_v7  ;;  %v103_v24 = vmin.f32 %v101_v19, 0.0  ;;  %v110_v27 = vsub.f32 1.0, %v210_v4 }
   0x7   :  { %171 = vst [vmem:[%s242_s2 + $0x10] sm:$0xff] %v149_v13  ;;  %vm82_vm2 = vcmp.ge.f32.partialorder %v62_v0, 0.0  ;;  %vm83_vm3 = vcmp.ge.f32.partialorder %v63_v1, 0.0  ;;  %v111_v34 = vsub.f32 1.0, %v215_v5  ;;  %vm126_vm4 = vcmp.lt.f32.partialorder %v210_v4, 1.0 }
   0x8   :  { %173 = vpow2.f32 %v70_v8  ;;  %v112_v40 = vmul.f32 %v110_v27, %v110_v27  ;;  %vm127_vm5 = vcmp.lt.f32.partialorder %v215_v5, 1.0 }
   0x9   :  { %175 = vpow2.f32 %v72_v9  ;;  %v113_v47 = vmul.f32 %v111_v34, %v111_v34 }
   0xa   :  { %v114_v54 = vmul.f32 %v112_v40, %v112_v40 }
   0xb   :  { %v115_v58 = vmul.f32 %v113_v47, %v113_v47 }
  0x12   :  { %v174_v14 = vpop.eup %173 }
  0x13   :  { %v176_v15 = vpop.eup %175  ;;  %v74_v16 = vadd.f32 1.0, %v174_v14 }
  0x14   :  { %v75_v17 = vadd.f32 1.0, %v176_v15 }
  0x15   :  { %177 = vlog2.f32 %v74_v16 }
  0x16   :  { %179 = vlog2.f32 %v75_v17 }
  0x17   :  { %181 = vrcp.f32 %v74_v16 }
  0x18   :  { %183 = vrcp.f32 %v75_v17 }
  0x1f   :  { %v178_v22 = vpop.eup %177 }
  0x20   :  { %v180_v25 = vpop.eup %179  ;;  %v77_v26 = vmul.f32 0.6931472, %v178_v22 }
  0x21   :  { %v182_v28 = vpop.eup %181  ;;  %v79_v29 = vmul.f32 0.6931472, %v180_v25 }
  0x22   :  { %v184_v30 = vpop.eup %183  ;;  %v84_v31 = vmul.f32 %v182_v28, %v174_v14  ;;  %v94_v32 = vsub.f32 %v92_v20, %v77_v26  ;;  %v104_v33 = vsub.f32 %v102_v21, %v77_v26 }
  0x23   :  { %v85_v35 = vmul.f32 %v184_v30, %v176_v15  ;;  %v95_v36 = vsub.f32 %v93_v23, %v79_v29  ;;  %v105_v37 = vsub.f32 %v103_v24, %v79_v29 }
  0x24   :  { %v86_v38 = vsel %vm82_vm2, %v182_v28, %v84_v31  ;;  %v106_v39 = vmax.f32 %v104_v33, -9.2103405  ;;  %v96_v43 = vmax.f32 %v94_v32, -9.2103405 }
  0x25   :  { %v87_v41 = vsel %vm83_vm3, %v184_v30, %v85_v35  ;;  %v88_v42 = vmax.f32 %v86_v38, 0.0001  ;;  %v107_v44 = vmax.f32 %v105_v37, -9.2103405  ;;  %v97_v46 = vmax.f32 %v95_v36, -9.2103405 }
  0x26   :  { %v89_v45 = vmax.f32 %v87_v41, 0.0001  ;;  %v108_v49 = vmin.f32 %v106_v39, -0.000100005  ;;  %v98_v52 = vmin.f32 %v96_v43, -0.000100005 }
  0x27   :  { %v90_v48 = vmin.f32 %v88_v42, 0.9999  ;;  %v109_v51 = vmin.f32 %v107_v44, -0.000100005  ;;  %v99_v56 = vmin.f32 %v97_v46, -0.000100005 }
  0x28   :  { %v91_v50 = vmin.f32 %v89_v45, 0.9999 }
  0x29   :  { %v116_v53 = vsub.f32 1.0, %v90_v48  ;;  %v128_v55 = vmul.f32 %v90_v48, %v90_v48 }
  0x2a   :  { %v117_v57 = vsub.f32 1.0, %v91_v50  ;;  %v129_v59 = vmul.f32 %v91_v50, %v91_v50 }
  0x2b   :  { %v120_v60 = vmul.f32 %v116_v53, %v116_v53  ;;  %v130_v61 = vmul.f32 %v128_v55, %v108_v49 }
  0x2c   :  { %v121_v62 = vmul.f32 %v117_v57, %v117_v57  ;;  %v131_v63 = vmul.f32 %v129_v59, %v109_v51 }
  0x2d   :  { %v122_v0 = vmul.f32 %v120_v60, %v98_v52  ;;  %v132_v1 = vmul.f32 %v130_v61, %v114_v54 }
  0x2e   :  { %v123_v2 = vmul.f32 %v121_v62, %v99_v56  ;;  %v133_v3 = vmul.f32 %v131_v63, %v115_v58 }
  0x2f   :  { %v124_v6 = vsel %vm118_vm0, %v122_v0, 0.0  ;;  %v134_v7 = vsel %vm126_vm4, %v132_v1, 0.0 }
  0x30   :  { %v125_v8 = vsel %vm119_vm1, %v123_v2, 0.0  ;;  %v135_v9 = vsel %vm127_vm5, %v133_v3, 0.0 }
  0x31   :  { %v139_v10 = vadd.f32 %v125_v8, %v124_v6  ;;  %v144_v11 = vadd.f32 %v135_v9, %v134_v7 }
  0x33   :  { %141 = vst [vmem:[%s242_s2] sm:$0xff] %v139_v10  ;;  %169 = vst [vmem:[%s242_s2 + $0x8] sm:$0xff] %v144_v11 }

// kernel: fn.3
= control target key start
LH: loop header
LB: loop body
LE: loop exit
PB: predicated region body
PF: predicated region fallthrough
CT: control target
= control target key end

     0   :  { %s339_s0 = inlined_call_operand.vmem [shape: f32[8,8,128], index: 0, kind: input, shape index: {}]   ;;  %s340_s1 = inlined_call_operand.vmem [shape: f32[8,128], index: 1, kind: input, shape index: {}]   ;;  %s341_s2 = inlined_call_operand.vmem [shape: f32[8,128], index: 2, kind: input, shape index: {}]   ;;  %s342_s3 = inlined_call_operand.vmem [shape: f32[8], index: 3, kind: output, shape index: {}]  }
   0x1   :  { %v35_v0 = vld [vmem:[%s340_s1] sm:$0xff]  ;;  %v231_v1 = vld [vmem:[%s339_s0 + $0x10] sm:$0xff]  ;;  %v234_v5 = vld [vmem:[%s339_s0 + $0x18] sm:$0xff] }
   0x2   :  { %v37_v2 = vld [vmem:[%s339_s0] sm:$0xff]  ;;  %v82_v3 = vsub.f32 %v231_v1, %v35_v0  ;;  %v228_v6 = vld [vmem:[%s339_s0 + $0x8] sm:$0xff]  ;;  %v104_v8 = vsub.f32 %v234_v5, %v35_v0  ;;  %v246_v12 = vld [vmem:[%s339_s0 + $0x38] sm:$0xff] }
   0x3   :  { %v38_v4 = vsub.f32 %v37_v2, %v35_v0  ;;  %v36_v7 = vld [vmem:[%s341_s2] sm:$0xff]  ;;  %v60_v9 = vsub.f32 %v228_v6, %v35_v0  ;;  %v240_v10 = vld [vmem:[%s339_s0 + $0x28] sm:$0xff]  ;;  %v243_v17 = vld [vmem:[%s339_s0 + $0x30] sm:$0xff] }
   0x4   :  { %v237_v11 = vld [vmem:[%s339_s0 + $0x20] sm:$0xff]  ;;  %v83_v13 = vand.u32 2147483647, %v82_v3  ;;  %v148_v15 = vsub.f32 %v240_v10, %v36_v7  ;;  %v105_v18 = vand.u32 2147483647, %v104_v8  ;;  %v192_v20 = vsub.f32 %v246_v12, %v36_v7 }
   0x5   :  { %v39_v14 = vand.u32 2147483647, %v38_v4  ;;  %v126_v16 = vsub.f32 %v237_v11, %v35_v0  ;;  %v61_v19 = vand.u32 2147483647, %v60_v9  ;;  %v170_v21 = vsub.f32 %v243_v17, %v36_v7 }
   0x6   :  { %8 = vsyncpa [#allocation3], 0  ;;  %vm84_vm0 = vcmp.lt.f32.partialorder %v83_v13, 1.0  ;;  %v85_v22 = vmul.f32 0.5, %v83_v13  ;;  %v232_v23 = vadd.f32 -0.5, %v83_v13  ;;  %vm106_vm2 = vcmp.lt.f32.partialorder %v105_v18, 1.0 }
   0x7   :  { %vm40_vm1 = vcmp.lt.f32.partialorder %v39_v14, 1.0  ;;  %v41_v24 = vmul.f32 0.5, %v39_v14  ;;  %v227_v25 = vadd.f32 -0.5, %v39_v14  ;;  %v107_v26 = vmul.f32 0.5, %v105_v18  ;;  %s218_s11 = sshll.u32 %s342_s3, 4  ;;  %s219_s11 = int_to_ptr.vmem [resolvable:$true] %s218_s11 }
   0x8   :  { %v86_v27 = vmul.f32 %v85_v22, %v83_v13  ;;  %v235_v28 = vadd.f32 -0.5, %v105_v18  ;;  %vm62_vm3 = vcmp.lt.f32.partialorder %v61_v19, 1.0  ;;  %v63_v29 = vmul.f32 0.5, %v61_v19  ;;  %s267_s13 = scalar_lea.vmem %s219_s11, 16  ;;  %p272_p1 = scmp.lt.s32.totalorder %s219_s11, %s219_s11 }
   0x9   :  { %v42_v30 = vmul.f32 %v41_v24, %v39_v14  ;;  %v108_v31 = vmul.f32 %v107_v26, %v105_v18  ;;  %v229_v32 = vadd.f32 -0.5, %v61_v19  ;;  %v149_v33 = vand.u32 2147483647, %v148_v15  ;;  %p268_p0 = scmp.ne.s32.totalorder %s219_s11, %s267_s13  ;;  %p273_p2 = scmp.lt.s32.totalorder %s267_s13, %s267_s13 }
   0xa   :  { %v88_v34 = vsel %vm84_vm0, %v86_v27, %v232_v23  ;;  %v64_v35 = vmul.f32 %v63_v29, %v61_v19  ;;  %v127_v36 = vand.u32 2147483647, %v126_v16  ;;  %v193_v37 = vand.u32 2147483647, %v192_v20 }
   0xb   :  { %90 = vadd.xlane.f32.xlu1 %v88_v34  ;;  %v44_v38 = vsel %vm40_vm1, %v42_v30, %v227_v25  ;;  %v151_v39 = vmul.f32 0.5, %v149_v33  ;;  %v110_v40 = vsel %vm106_vm2, %v108_v31, %v235_v28  ;;  %vm150_vm4 = vcmp.lt.f32.partialorder %v149_v33, 1.0  ;;  %p274_p3 = por %p273_p2, %p272_p1 }
   0xc   :  { %46 = vadd.xlane.f32.xlu0 %v44_v38  ;;  %v241_v41 = vadd.f32 -0.5, %v149_v33  ;;  %v129_v42 = vmul.f32 0.5, %v127_v36  ;;  %v66_v43 = vsel %vm62_vm3, %v64_v35, %v229_v32  ;;  %v238_v45 = vadd.f32 -0.5, %v127_v36 }
   0xd   :  { %v152_v44 = vmul.f32 %v151_v39, %v149_v33  ;;  %v195_v46 = vmul.f32 0.5, %v193_v37  ;;  %vm128_vm5 = vcmp.lt.f32.partialorder %v127_v36, 1.0  ;;  %v171_v48 = vand.u32 2147483647, %v170_v21  ;;  %p275_p4 = pnand %p274_p3, %p268_p0 }
   0xe   :  { %v130_v47 = vmul.f32 %v129_v42, %v127_v36  ;;  %v247_v51 = vadd.f32 -0.5, %v193_v37  ;;  %vm194_vm6 = vcmp.lt.f32.partialorder %v193_v37, 1.0 }
   0xf   :  { %112 = vadd.xlane.f32.xlu1 %v110_v40  ;;  %v154_v49 = vsel %vm150_vm4, %v152_v44, %v241_v41  ;;  %v196_v50 = vmul.f32 %v195_v46, %v193_v37  ;;  %v173_v52 = vmul.f32 0.5, %v171_v48  ;;  %v244_v54 = vadd.f32 -0.5, %v171_v48 }
  0x10   :  { %68 = vadd.xlane.f32.xlu0 %v66_v43  ;;  %v132_v53 = vsel %vm128_vm5, %v130_v47, %v238_v45  ;;  %vm172_vm7 = vcmp.lt.f32.partialorder %v171_v48, 1.0 }
  0x11   :  { %v174_v55 = vmul.f32 %v173_v52, %v171_v48  ;;  %v198_v56 = vsel %vm194_vm6, %v196_v50, %v247_v51 }
  0x13   :  { %156 = vadd.xlane.f32.xlu1 %v154_v49  ;;  %v176_v57 = vsel %vm172_vm7, %v174_v55, %v244_v54 }
  0x14   :  { %134 = vadd.xlane.f32.xlu0 %v132_v53 }
  0x17   :  { %200 = vadd.xlane.f32.xlu1 %v198_v56 }
  0x18   :  { %178 = vadd.xlane.f32.xlu0 %v176_v57 }
  0x98   :  { %v91_v58 = vpop.xlane.xlu1 %90 }
  0x99   :  { %v92_v59 = vrot.slane %v91_v58, 4  ;;  %v47_v60 = vpop.xlane.xlu0 %46 }
  0x9a   :  { %v48_v61 = vrot.slane %v47_v60, 4 }
  0x9b   :  { %v93_v62 = vadd.f32 %v92_v59, %v91_v58 }
  0x9c   :  { %v49_v63 = vadd.f32 %v48_v61, %v47_v60  ;;  %v113_v0 = vpop.xlane.xlu1 %112 }
  0x9d   :  { %v94_v1 = vrot.slane %v93_v62, 2  ;;  %v114_v2 = vrot.slane %v113_v0, 4  ;;  %v69_v3 = vpop.xlane.xlu0 %68 }
  0x9e   :  { %v50_v4 = vrot.slane %v49_v63, 2  ;;  %v70_v5 = vrot.slane %v69_v3, 4 }
  0x9f   :  { %v115_v6 = vadd.f32 %v114_v2, %v113_v0  ;;  %v95_v13 = vadd.f32 %v94_v1, %v93_v62 }
  0xa0   :  { %v71_v7 = vadd.f32 %v70_v5, %v69_v3  ;;  %v157_v8 = vpop.xlane.xlu1 %156  ;;  %v51_v9 = vadd.f32 %v50_v4, %v49_v63 }
  0xa1   :  { %v116_v10 = vrot.slane %v115_v6, 2  ;;  %v158_v11 = vrot.slane %v157_v8, 4  ;;  %v135_v12 = vpop.xlane.xlu0 %134  ;;  %v96_v26 = vrot.slane %v95_v13, 1 }
  0xa2   :  { %v72_v14 = vrot.slane %v71_v7, 2  ;;  %v136_v15 = vrot.slane %v135_v12, 4  ;;  %v52_v16 = vrot.slane %v51_v9, 1 }
  0xa3   :  { %v159_v17 = vadd.f32 %v158_v11, %v157_v8  ;;  %v117_v18 = vadd.f32 %v116_v10, %v115_v6  ;;  %v97_v38 = vadd.f32 %v96_v26, %v95_v13 }
  0xa4   :  { %v137_v19 = vadd.f32 %v136_v15, %v135_v12  ;;  %v201_v20 = vpop.xlane.xlu1 %200  ;;  %v53_v21 = vadd.f32 %v52_v16, %v51_v9  ;;  %v73_v22 = vadd.f32 %v72_v14, %v71_v7 }
  0xa5   :  { %v160_v23 = vrot.slane %v159_v17, 2  ;;  %v202_v24 = vrot.slane %v201_v20, 4  ;;  %v179_v25 = vpop.xlane.xlu0 %178  ;;  %v118_v27 = vrot.slane %v117_v18, 1 }
  0xa6   :  { %v138_v28 = vrot.slane %v137_v19, 2  ;;  %v180_v29 = vrot.slane %v179_v25, 4  ;;  %249 = vpush %v53_v21  ;;  %v74_v30 = vrot.slane %v73_v22, 1 }
  0xa7   :  { %v203_v31 = vadd.f32 %v202_v24, %v201_v20  ;;  %v161_v32 = vadd.f32 %v160_v23, %v159_v17  ;;  %v119_v35 = vadd.f32 %v118_v27, %v117_v18 }
  0xa8   :  { %v181_v33 = vadd.f32 %v180_v29, %v179_v25  ;;  %v75_v34 = vadd.f32 %v74_v30, %v73_v22  ;;  %v139_v36 = vadd.f32 %v138_v28, %v137_v19 }
  0xa9   :  { %v204_v37 = vrot.slane %v203_v31, 2  ;;  %v162_v39 = vrot.slane %v161_v32, 1 }
  0xaa   :  { %v182_v40 = vrot.slane %v181_v33, 2  ;;  %251 = vpush %v75_v34  ;;  %v140_v41 = vrot.slane %v139_v36, 1 }
  0xab   :  { %v205_v42 = vadd.f32 %v204_v37, %v203_v31  ;;  %253 = vpush %v97_v38  ;;  %v163_v43 = vadd.f32 %v162_v39, %v161_v32 }
  0xac   :  { %v183_v44 = vadd.f32 %v182_v40, %v181_v33  ;;  %255 = vpush %v119_v35  ;;  %v141_v45 = vadd.f32 %v140_v41, %v139_v36 }
  0xad   :  { %v206_v46 = vrot.slane %v205_v42, 1 }
  0xae   :  { %257 = vpush %v141_v45  ;;  %v184_v47 = vrot.slane %v183_v44, 1 }
  0xaf   :  { %259 = vpush %v163_v43  ;;  %v207_v48 = vadd.f32 %v206_v46, %v205_v42 }
  0xb0   :  { %v185_v49 = vadd.f32 %v184_v47, %v183_v44 }
  0xb2   :  { %261 = vpush %v185_v49 }
  0xb3   :  { %263 = vpush %v207_v48 }
  0xd7   :  { %s250_s0 = spop %249 }
  0xd8   :  { %57 = sst [smem:[#allocation2]] %s250_s0 }
  0xdb   :  { %s252_s30 = spop %251 }
  0xdc   :  { %s254_s4 = spop %253  ;;  %79 = sst [smem:[#allocation2 + $0x1]] %s252_s30 }
  0xdd   :  { %s256_s5 = spop %255  ;;  %101 = sst [smem:[#allocation2 + $0x2]] %s254_s4 }
  0xde   :  { %123 = sst [smem:[#allocation2 + $0x3]] %s256_s5 }
  0xdf   :  { %s258_s6 = spop %257 }
  0xe0   :  { %s260_s7 = spop %259  ;;  %145 = sst [smem:[#allocation2 + $0x4]] %s258_s6 }
  0xe1   :  { %167 = sst [smem:[#allocation2 + $0x5]] %s260_s7 }
  0xe3   :  { %s262_s8 = spop %261 }
  0xe4   :  { %s264_s12 = spop %263  ;;  %189 = sst [smem:[#allocation2 + $0x6]] %s262_s8 }
  0xe5   :  { %211 = sst [smem:[#allocation2 + $0x7]] %s264_s12 }
  0xe6   :  { %278 = shalt.err (!%p275_p4)
}
  0xe7   :  { %s281_s14 = smov [#allocation2]  }
  0xe8   :  { %221 = dma.smem_to_vmem %s281_s14, 16, %s219_s11, [#allocation3]  }
  0xe9   :  { %279 = dma.done.wait [#allocation3], 16  }
  0xea   :  { %280 = vsyncadd [#allocation3], 4294967280 }
  0xeb   :  { %225 = sfence }
  0xec   :  { %226 = vsyncpa [#allocation3], 1 }

</bundles_post_ra>
